<compile_context>
chip_gen: v6e
topology: v6e:2x2x1
jax: 0.10.0
libtpu: 0.0.40
codegen_flags: <defaults>
</compile_context>

<pallas_src>
import functools
from typing import NamedTuple

import jax
import jax.numpy as jnp
from jax.experimental import pallas as pl
from jax.experimental.pallas import tpu as pltpu

_LANE = 128


def _round_up(x, m):
    return (x + m - 1) // m * m


def _vmem_capacity_bytes():
    # 128 MiB on v5e/v6e, 64 MiB per TensorCore on v7x.  Conservative fallback.
    try:
        return int(pltpu.get_tpu_info().vmem_capacity_bytes)
    except Exception:
        return 64 * 1024 * 1024


def _resident_vmem_bytes(tm, Cp, Hp):
    # Conservative (assumes double-buffering everywhere even where Buffered(1) is used).
    return (2 * 2 * Cp * Hp * 2            # W1 + W2 (bf16)
            + 2 * 8 * (Hp + Cp) * 4        # biases (sublane-padded f32)
            + 2 * tm * Cp * 2              # x tiles (bf16, double-buffered)
            + 2 * tm * Cp * 4              # out tiles (f32, double-buffered)
            + tm * Hp * (4 + 2))           # (tm, Hp) ReLU intermediate f32 + bf16 cast


def _tiled_vmem_bytes(tm, th, Cp):
    return (2 * 2 * Cp * th * 2            # W1/W2 H-slices (bf16, double-buffered)
            + 2 * 8 * (th + Cp) * 4        # bias tiles (f32)
            + 2 * tm * Cp * 2              # x tiles (bf16)
            + 2 * tm * Cp * 4              # out tiles (f32)
            + tm * th * (4 + 2))           # (tm, th) ReLU intermediate


def _maybe_buffered_spec(shape, index_map, buffers=1):
    """BlockSpec for constant-index (resident) blocks: single-buffered if supported."""
    try:
        return pl.BlockSpec(shape, index_map, pipeline_mode=pl.Buffered(buffers))
    except TypeError:  # older BlockSpec without pipeline_mode: just double-buffer it
        return pl.BlockSpec(shape, index_map)


# ----------------------------------------------------------------------------- kernels
def _ffn_resident_kernel(x_ref, w1_ref, b1_ref, w2_ref, b2_ref, o_ref):
    # x: (tm, Cp) bf16 | w1: (Cp, Hp) bf16 | b1: (1, Hp) f32
    # w2: (Hp, Cp) bf16 | b2: (1, Cp) f32  | o: (tm, Cp) f32
    h = jnp.dot(x_ref[...], w1_ref[...], preferred_element_type=jnp.float32)
    h = jnp.maximum(h + b1_ref[...], 0.0)
    y = jnp.dot(h.astype(jnp.bfloat16), w2_ref[...],
                preferred_element_type=jnp.float32)
    # Dropout(p=0.0) is the identity (inference); p>0 would need pltpu.prng_* masking.
    o_ref[...] = (y + b2_ref[...]).astype(o_ref.dtype)


def _ffn_tiled_kernel(x_ref, w1_ref, b1_ref, w2_ref, b2_ref, o_ref):
    # Fallback when weights don't fit VMEM: H tiled on the innermost ("arbitrary")
    # grid axis, accumulation directly into the resident f32 output block.
    hk = pl.program_id(1)

    @pl.when(hk == 0)
    def _():
        o_ref[...] = jnp.zeros_like(o_ref)

    h = jnp.dot(x_ref[...], w1_ref[...], preferred_element_type=jnp.float32)
    h = jnp.maximum(h + b1_ref[...], 0.0)
    o_ref[...] += jnp.dot(h.astype(jnp.bfloat16), w2_ref[...],
                          preferred_element_type=jnp.float32)

    @pl.when(hk == pl.num_programs(1) - 1)
    def _():
        o_ref[...] += b2_ref[...]


# ----------------------------------------------------------------------------- wrapper
class FFNMeta(NamedTuple):
    C: int
    H: int
    Cp: int
    Hp: int
    th: int
    resident: bool
    budget: int


def prepare_ffn_params(w1, b1, w2, b2):
    """One-time pad + f32->bf16 cast of the weights (hoisted out of the hot path)."""
    C, H = w1.shape
    Cp = _round_up(C, _LANE)
    budget = int(_vmem_capacity_bytes() * 3 // 4)   # leave ~25% headroom

    Hp128 = _round_up(H, _LANE)
    resident = _resident_vmem_bytes(_LANE, Cp, Hp128) <= budget
    if resident:
        Hp, th = Hp128, Hp128
    else:
        th = _LANE
        for cand in (1024, 512, 256):
            if _tiled_vmem_bytes(_LANE, cand, Cp) <= budget:
                th = cand
                break
        Hp = _round_up(H, th)

    w1p = jnp.pad(w1, ((0, Cp - C), (0, Hp - H))).astype(jnp.bfloat16)
    b1p = jnp.pad(b1.reshape(1, H).astype(jnp.float32), ((0, 0), (0, Hp - H)))
    w2p = jnp.pad(w2, ((0, Hp - H), (0, Cp - C))).astype(jnp.bfloat16)
    b2p = jnp.pad(b2.reshape(1, C).astype(jnp.float32), ((0, 0), (0, Cp - C)))
    meta = FFNMeta(C=C, H=H, Cp=Cp, Hp=Hp, th=th, resident=resident, budget=budget)
    return (w1p, b1p, w2p, b2p), meta


@functools.partial(jax.jit, static_argnames=("meta",))
def feed_forward(x, params, meta):
    """x: (B, T, C) float32. params from prepare_ffn_params. Returns (B, T, C)."""
    w1p, b1p, w2p, b2p = params
    B, T, C = x.shape
    assert C == meta.C
    Cp, Hp, th = meta.Cp, meta.Hp, meta.th
    M = B * T

    # --- M-tile selection: VMEM-aware, >=2 tiles when there is enough work (v7x megacore).
    Mp128 = _round_up(M, _LANE)
    max_tm = Mp128 if Mp128 < 2 * _LANE else Mp128 // 2
    if meta.resident:
        fits = lambda t: _resident_vmem_bytes(t, Cp, Hp) <= meta.budget
    else:
        fits = lambda t: _tiled_vmem_bytes(t, th, Cp) <= meta.budget
    tm = _LANE
    for cand in (1024, 512, 256, 128):
        if cand <= max_tm and fits(cand):
            tm = cand
            break
    Mp = _round_up(M, tm)

    # --- pad the activations only when needed (weights were pre-padded/cast).
    x2d = x.reshape(M, C)
    if (Mp, Cp) != (M, C):
        x2d = jnp.pad(x2d, ((0, Mp - M), (0, Cp - C)))
    x_bf = x2d.astype(jnp.bfloat16)

    n_m = Mp // tm
    if meta.resident:
        grid = (n_m,)
        in_specs = [
            pl.BlockSpec((tm, Cp), lambda i: (i, 0)),          # x streamed over M
            _maybe_buffered_spec((Cp, Hp), lambda i: (0, 0)),  # W1 resident (fetched once)
            _maybe_buffered_spec((1, Hp), lambda i: (0, 0)),   # b1 resident
            _maybe_buffered_spec((Hp, Cp), lambda i: (0, 0)),  # W2 resident
            _maybe_buffered_spec((1, Cp), lambda i: (0, 0)),   # b2 resident
        ]
        out_specs = pl.BlockSpec((tm, Cp), lambda i: (i, 0))
        kernel = _ffn_resident_kernel
        dims = ("parallel",)
        weight_bytes = 2 * Cp * Hp * 2                         # fetched exactly once
    else:
        n_h = Hp // th
        grid = (n_m, n_h)
        in_specs = [
            pl.BlockSpec((tm, Cp), lambda i, h: (i, 0)),       # x streamed over M
            pl.BlockSpec((Cp, th), lambda i, h: (0, h)),       # W1 streamed over H
            pl.BlockSpec((1, th), lambda i, h: (0, h)),        # b1 streamed over H
            pl.BlockSpec((th, Cp), lambda i, h: (h, 0)),       # W2 streamed over H
            _maybe_buffered_spec((1, Cp), lambda i, h: (0, 0)),  # b2 resident
        ]
        out_specs = pl.BlockSpec((tm, Cp), lambda i, h: (i, 0))
        kernel = _ffn_tiled_kernel
        dims = ("parallel", "arbitrary")
        weight_bytes = n_m * 2 * Cp * Hp * 2                   # re-streamed per M tile

    flops = 4 * Mp * Cp * Hp                                   # two (Mp x Cp x Hp) matmuls
    bytes_accessed = (Mp * Cp * 2      # x in (bf16)
                      + Mp * Cp * 4    # y out (f32)
                      + weight_bytes   # weights (bf16)
                      + 8 * (Hp + Cp) * 4)
    vmem_limit = int(max(meta.budget, 32 * 1024 * 1024))

    out = pl.pallas_call(
        kernel,
        out_shape=jax.ShapeDtypeStruct((Mp, Cp), jnp.float32),
        grid=grid,
        in_specs=in_specs,
        out_specs=out_specs,
        compiler_params=pltpu.CompilerParams(
            dimension_semantics=dims,
            vmem_limit_bytes=vmem_limit,
        ),
        cost_estimate=pl.CostEstimate(
            flops=flops, transcendentals=0, bytes_accessed=bytes_accessed),
    )(x_bf, w1p, b1p, w2p, b2p)

    return out[:M, :C].reshape(B, T, C).astype(x.dtype)


def init_params(key, n_embed):
    """Deterministic init mimicking PyTorch nn.Linear default (U(-1/sqrt(fan_in), ...))."""
    hidden = 4 * n_embed
    k1, k2, k3, k4 = jax.random.split(key, 4)
    bound1 = 1.0 / jnp.sqrt(n_embed)
    bound2 = 1.0 / jnp.sqrt(hidden)
    # Stored transposed relative to PyTorch ((out,in) -> (in,out)) so the kernel does x @ W.
    w1 = jax.random.uniform(k1, (n_embed, hidden), jnp.float32, -bound1, bound1)
    b1 = jax.random.uniform(k2, (hidden,), jnp.float32, -bound1, bound1)
    w2 = jax.random.uniform(k3, (hidden, n_embed), jnp.float32, -bound2, bound2)
    b2 = jax.random.uniform(k4, (n_embed,), jnp.float32, -bound2, bound2)
    return w1, b1, w2, b2


if __name__ == "__main__":
    n_embed = 64
    B, T = 2, 8
    key = jax.random.PRNGKey(0)
    kx, kp = jax.random.split(key)
    x = jax.random.normal(kx, (B, T, n_embed), dtype=jnp.float32)
    w1, b1, w2, b2 = init_params(kp, n_embed)

    params, meta = prepare_ffn_params(w1, b1, w2, b2)   # pad + bf16 cast, once
    y = feed_forward(x, params, meta)
    jax.block_until_ready(y)

    # Reference in plain f32 JAX. Kernel matmuls use bf16 operands with f32 accumulation,
    # so the tolerance is loosened accordingly.
    ref = jnp.maximum(x.reshape(-1, n_embed) @ w1 + b1, 0.0) @ w2 + b2
    ref = ref.reshape(B, T, n_embed)
    assert jnp.allclose(y, ref, atol=5e-2, rtol=5e-2), "mismatch vs reference"

    print("KERNEL_OK")
</pallas_src>

<mosaic_0001>
module attributes {stable_mosaic.version = 11 : i64} {
  func.func @_ffn_resident_kernel(%arg0: i32, %arg1: memref<128x128xbf16, #tpu.memory_space<vmem>>, %arg2: memref<128x256xbf16, #tpu.memory_space<vmem>>, %arg3: memref<1x256xf32, #tpu.memory_space<vmem>>, %arg4: memref<256x128xbf16, #tpu.memory_space<vmem>>, %arg5: memref<1x128xf32, #tpu.memory_space<vmem>>, %arg6: memref<128x128xf32, #tpu.memory_space<vmem>>) attributes {dimension_semantics = [#tpu.dimension_semantics<parallel>], iteration_bounds = array<i64: 1>, scalar_prefetch = 0 : i64, scratch_operands = 0 : i64, tpu.core_type = #tpu.core_type<tc>, window_params = [{transform_indices = @transform_0, window_bounds = array<i64: 128, 128>}, {pipeline_mode = #tpu.pipeline_mode<synchronous>, transform_indices = @transform_1, window_bounds = array<i64: 128, 256>}, {pipeline_mode = #tpu.pipeline_mode<synchronous>, transform_indices = @transform_2, window_bounds = array<i64: 1, 256>}, {pipeline_mode = #tpu.pipeline_mode<synchronous>, transform_indices = @transform_3, window_bounds = array<i64: 256, 128>}, {pipeline_mode = #tpu.pipeline_mode<synchronous>, transform_indices = @transform_4, window_bounds = array<i64: 1, 128>}, {transform_indices = @transform_5, window_bounds = array<i64: 128, 128>}]} {
    %c0 = arith.constant 0 : index
    %c0_0 = arith.constant 0 : index
    %0 = vector.load %arg1[%c0, %c0_0] : memref<128x128xbf16, #tpu.memory_space<vmem>>, vector<128x128xbf16>
    %c0_1 = arith.constant 0 : index
    %c0_2 = arith.constant 0 : index
    %1 = vector.load %arg2[%c0_1, %c0_2] : memref<128x256xbf16, #tpu.memory_space<vmem>>, vector<128x256xbf16>
    %cst = arith.constant dense<0.000000e+00> : vector<128x256xf32>
    %2 = tpu.matmul %0, %1, %cst {dimension_numbers = #tpu.dot_dimension_numbers<[1], [0], [0], [1], [0, 0, 1, 1], [], []>} : vector<128x128xbf16>, vector<128x256xbf16>, vector<128x256xf32> -> vector<128x256xf32>
    %c0_3 = arith.constant 0 : index
    %c0_4 = arith.constant 0 : index
    %3 = vector.load %arg3[%c0_3, %c0_4] : memref<1x256xf32, #tpu.memory_space<vmem>>, vector<1x256xf32>
    %4 = vector.broadcast %3 : vector<1x256xf32> to vector<128x256xf32>
    %5 = arith.addf %2, %4 : vector<128x256xf32>
    %cst_5 = arith.constant 0.000000e+00 : f32
    %6 = vector.broadcast %cst_5 : f32 to vector<128x256xf32>
    %7 = arith.maximumf %5, %6 : vector<128x256xf32>
    %8 = arith.truncf %7 : vector<128x256xf32> to vector<128x256xbf16>
    %c0_6 = arith.constant 0 : index
    %c0_7 = arith.constant 0 : index
    %9 = vector.load %arg4[%c0_6, %c0_7] : memref<256x128xbf16, #tpu.memory_space<vmem>>, vector<256x128xbf16>
    %cst_8 = arith.constant dense<0.000000e+00> : vector<128x128xf32>
    %10 = tpu.matmul %8, %9, %cst_8 {dimension_numbers = #tpu.dot_dimension_numbers<[1], [0], [0], [1], [0, 0, 1, 1], [], []>} : vector<128x256xbf16>, vector<256x128xbf16>, vector<128x128xf32> -> vector<128x128xf32>
    %c0_9 = arith.constant 0 : index
    %c0_10 = arith.constant 0 : index
    %11 = vector.load %arg5[%c0_9, %c0_10] : memref<1x128xf32, #tpu.memory_space<vmem>>, vector<1x128xf32>
    %12 = vector.broadcast %11 : vector<1x128xf32> to vector<128x128xf32>
    %13 = arith.addf %10, %12 : vector<128x128xf32>
    %c0_11 = arith.constant 0 : index
    %c0_12 = arith.constant 0 : index
    %14 = vector.load %arg6[%c0_11, %c0_12] : memref<128x128xf32, #tpu.memory_space<vmem>>, vector<128x128xf32>
    tpu.vector_store %arg6[%c0_11, %c0_12], %13 {strides = array<i32>} : memref<128x128xf32, #tpu.memory_space<vmem>>, vector<128x128xf32>,
    return
  }
  func.func @transform_0(%arg0: i32) -> (i32, i32) {
    %c0_i32 = arith.constant 0 : i32
    %c0_i32_0 = arith.constant 0 : i32
    return %arg0, %c0_i32 : i32, i32
  }
  func.func @transform_1(%arg0: i32) -> (i32, i32) {
    %c0_i32 = arith.constant 0 : i32
    %c0_i32_0 = arith.constant 0 : i32
    %c0_i32_1 = arith.constant 0 : i32
    return %c0_i32, %c0_i32_0 : i32, i32
  }
  func.func @transform_2(%arg0: i32) -> (i32, i32) {
    %c0_i32 = arith.constant 0 : i32
    %c0_i32_0 = arith.constant 0 : i32
    %c0_i32_1 = arith.constant 0 : i32
    return %c0_i32, %c0_i32_0 : i32, i32
  }
  func.func @transform_3(%arg0: i32) -> (i32, i32) {
    %c0_i32 = arith.constant 0 : i32
    %c0_i32_0 = arith.constant 0 : i32
    %c0_i32_1 = arith.constant 0 : i32
    return %c0_i32, %c0_i32_0 : i32, i32
  }
  func.func @transform_4(%arg0: i32) -> (i32, i32) {
    %c0_i32 = arith.constant 0 : i32
    %c0_i32_0 = arith.constant 0 : i32
    %c0_i32_1 = arith.constant 0 : i32
    return %c0_i32, %c0_i32_0 : i32, i32
  }
  func.func @transform_5(%arg0: i32) -> (i32, i32) {
    %c0_i32 = arith.constant 0 : i32
    %c0_i32_0 = arith.constant 0 : i32
    return %arg0, %c0_i32 : i32, i32
  }
}

</mosaic_0001>

<bundles_post_ra>
// kernel: feed_forward.1
= control target key start
LH: loop header
LB: loop body
LE: loop exit
PB: predicated region body
PF: predicated region fallthrough
CT: control target
= control target key end

     0   :  { %10 = vsyncpa [#allocation3], 0  ;;  %s1023_s0 = inlined_call_operand.vmem [shape: bf16[128,128], index: 0, kind: input, shape index: {}]   ;;  %s1024_s1 = inlined_call_operand.hbm [shape: bf16[128,256], index: 1, kind: input, shape index: {}]   ;;  %s1025_s2 = inlined_call_operand.vmem [shape: f32[1,256], index: 2, kind: input, shape index: {}]   ;;  %s1026_s3 = inlined_call_operand.hbm [shape: bf16[256,128], index: 3, kind: input, shape index: {}]   ;;  %s1027_s4 = inlined_call_operand.vmem [shape: f32[1,128], index: 4, kind: input, shape index: {}]   ;;  %s1028_s5 = inlined_call_operand.vmem [shape: f32[128,128], index: 5, kind: output, shape index: {}]  }
   0x1   :  { %11 = vsyncpa [#allocation5], 0  ;;  %s840_s18 = smov [#allocation2]  }
   0x2   :  { %s19_s19 = sshll.u32 %s840_s18, 4  ;;  %s20_s19 = int_to_ptr.vmem [resolvable:$true] %s19_s19 }
   0x3   :  { %s804_s20 = scalar_lea.vmem %s20_s19, 2048  ;;  %p809_p1 = scmp.lt.s32.totalorder %s20_s19, %s20_s19 }
   0x4   :  { %p805_p0 = scmp.ne.s32.totalorder %s20_s19, %s804_s20  ;;  %p810_p2 = scmp.lt.s32.totalorder %s804_s20, %s804_s20 }
   0x6   :  { %p811_p3 = por %p810_p2, %p809_p1 }
   0x8   :  { %p812_p4 = pnand %p811_p3, %p805_p0 }
   0xa   :  { %815 = shalt.err (!%p812_p4)
}
   0xb   :  { %s841_s21 = smov 128   ;;  %s842_s22 = smov 8  }
   0xc   :  { %25 = dma.hbm_to_vmem [thread:$0]  %s1024_s1, 2048, %s20_s19, [#allocation3], %s841_s21, %s841_s21, %s842_s22  }
   0xd   :  { %s843_s25 = smov [#allocation4]  }
   0xe   :  { %s33_s26 = sshll.u32 %s843_s25, 4  ;;  %s34_s26 = int_to_ptr.vmem [resolvable:$true] %s33_s26 }
   0xf   :  { %s824_s27 = scalar_lea.vmem %s34_s26, 2048  ;;  %p829_p6 = scmp.lt.s32.totalorder %s34_s26, %s34_s26 }
  0x10   :  { %p825_p5 = scmp.ne.s32.totalorder %s34_s26, %s824_s27  ;;  %p830_p7 = scmp.lt.s32.totalorder %s824_s27, %s824_s27 }
  0x12   :  { %p831_p8 = por %p830_p7, %p829_p6 }
  0x14   :  { %p832_p9 = pnand %p831_p8, %p825_p5 }
  0x16   :  { %835 = shalt.err (!%p832_p9)
}
  0x17   :  { %s844_s28 = smov 64   ;;  %s845_s29 = smov 4  }
  0x18   :  { %39 = dma.hbm_to_vmem [thread:$0]  %s1026_s3, 2048, %s34_s26, [#allocation5], %s844_s28, %s844_s28, %s845_s29  }
  0x19   :  { %836 = dma.done.wait [#allocation3], 2048  }
  0x1a   :  { %837 = vsyncadd [#allocation3], 4294965248 }
  0x1b   :  { %838 = dma.done.wait [#allocation5], 2048  }
  0x1c   :  { %839 = vsyncadd [#allocation5], 4294965248  ;;  %v846_v0 = vmov 0   ;;  %v748_v1 = vld [vmem:[#allocation2 + $0x74] ss:$8 sps:$4 sm:$0xff]   ;;  %v784_v19 = vld [vmem:[#allocation4 + $0x68] sm:$0xff]   ;;  %v83_v41 = vlaneseq }
  0x1d   :  { %253 = vmatprep.mubr.bf16.mxu0 %v846_v0  ;;  %v750_v2 = vld [vmem:[#allocation2 + $0x70] ss:$8 sps:$4 sm:$0xff]   ;;  %221 = vmatprep.subr.bf16.mxu0 %v748_v1  ;;  %v751_v3 = vld [vmem:[#allocation2 + $0x64] ss:$8 sps:$4 sm:$0xff]   ;;  %v753_v4 = vld [vmem:[#allocation2 + $0x60] ss:$8 sps:$4 sm:$0xff]  }
  0x1e   :  { %222 = vmatpush1.bf16.msra.mxu0 %v750_v2  ;;  %v754_v5 = vld [vmem:[#allocation2 + $0x54] ss:$8 sps:$4 sm:$0xff]   ;;  %v756_v6 = vld [vmem:[#allocation2 + $0x50] ss:$8 sps:$4 sm:$0xff]   ;;  %v757_v7 = vld [vmem:[#allocation2 + $0x44] ss:$8 sps:$4 sm:$0xff]  }
  0x1f   :  { %223 = vmatprep.subr.bf16.mxu0 %v751_v3  ;;  %v759_v8 = vld [vmem:[#allocation2 + $0x40] ss:$8 sps:$4 sm:$0xff]   ;;  %v760_v9 = vld [vmem:[#allocation2 + $0x34] ss:$8 sps:$4 sm:$0xff]   ;;  %v762_v10 = vld [vmem:[#allocation2 + $0x30] ss:$8 sps:$4 sm:$0xff]  }
  0x20   :  { %v763_v11 = vld [vmem:[#allocation2 + $0x24] ss:$8 sps:$4 sm:$0xff]   ;;  %v765_v12 = vld [vmem:[#allocation2 + $0x20] ss:$8 sps:$4 sm:$0xff]   ;;  %v766_v13 = vld [vmem:[#allocation2 + $0x14] ss:$8 sps:$4 sm:$0xff]  }
  0x21   :  { %v780_v14 = vld [vmem:[#allocation4 + $0x78] sm:$0xff]   ;;  %v782_v17 = vld [vmem:[#allocation4 + $0x70] sm:$0xff]   ;;  %v769_v20 = vld [vmem:[#allocation2 + $0x4] ss:$8 sps:$4 sm:$0xff]   ;;  %v84_v42 = vshrl.u32 %v83_v41, 7 }
  0x22   :  { %224 = vmatpush1.bf16.msra.mxu0 %v753_v4  ;;  %v781_v15 = vld [vmem:[#allocation4 + $0x38] sm:$0xff]   ;;  %677 = vmatprep.subr.bf16.mxu1 %v780_v14  ;;  %v783_v18 = vld [vmem:[#allocation4 + $0x30] sm:$0xff]   ;;  %v771_v21 = vld [vmem:[#allocation2] ss:$8 sps:$4 sm:$0xff]  }
  0x23   :  { %225 = vmatprep.subr.bf16.mxu0 %v754_v5  ;;  %v768_v16 = vld [vmem:[#allocation2 + $0x10] ss:$8 sps:$4 sm:$0xff]   ;;  %678 = vmatpush3.bf16.msra.mxu1 %v781_v15  ;;  %v785_v22 = vld [vmem:[#allocation4 + $0x28] sm:$0xff]   ;;  %v786_v23 = vld [vmem:[#allocation4 + $0x60] sm:$0xff]   ;;  %v89_v43 = vsub.s32 1, %v84_v42  ;;  %v85_v44 = vsub.s32 0, %v84_v42 }
  0x24   :  { %679 = vmatprep.subr.bf16.mxu1 %v782_v17  ;;  %v772_v24 = vld [vmem:[%s1023_s0] sm:$0xff]   ;;  %v788_v26 = vld [vmem:[#allocation4 + $0x58] sm:$0xff]   ;;  %v773_v28 = vld [vmem:[%s1023_s0 + $0x8] sm:$0xff]  }
  0x25   :  { %v787_v25 = vld [vmem:[#allocation4 + $0x20] sm:$0xff]   ;;  %v789_v27 = vld [vmem:[#allocation4 + $0x18] sm:$0xff]   ;;  %v774_v29 = vld [vmem:[%s1023_s0 + $0x10] sm:$0xff]  }
  0x26   :  { %226 = vmatpush1.bf16.msra.mxu0 %v756_v6  ;;  %v775_v30 = vld [vmem:[%s1023_s0 + $0x18] sm:$0xff]   ;;  %v776_v31 = vld [vmem:[%s1023_s0 + $0x20] sm:$0xff]   ;;  %v777_v32 = vld [vmem:[%s1023_s0 + $0x28] sm:$0xff]  }
  0x27   :  { %227 = vmatprep.subr.bf16.mxu0 %v757_v7  ;;  %680 = vmatpush3.bf16.msra.mxu1 %v783_v18  ;;  %v778_v33 = vld [vmem:[%s1023_s0 + $0x30] sm:$0xff]   ;;  %v779_v34 = vld [vmem:[%s1023_s0 + $0x38] sm:$0xff]   ;;  %v792_v37 = vld [vmem:[#allocation4 + $0x48] sm:$0xff]  }
  0x28   :  { %681 = vmatprep.subr.bf16.mxu1 %v784_v19  ;;  %v790_v35 = vld [vmem:[#allocation4 + $0x50] sm:$0xff]   ;;  %v793_v38 = vld [vmem:[#allocation4 + $0x8] sm:$0xff]   ;;  %v794_v39 = vld [vmem:[#allocation4 + $0x40] sm:$0xff]  }
  0x29   :  { %v791_v36 = vld [vmem:[#allocation4 + $0x10] sm:$0xff]   ;;  %v795_v40 = vld [vmem:[#allocation4] sm:$0xff]  }
  0x2a   :  { %228 = vmatpush1.bf16.msra.mxu0 %v759_v8  ;;  %v81_v45 = vld [vmem:[%s1025_s2] sm:$0x3] }
  0x2b   :  { %229 = vmatprep.subr.bf16.mxu0 %v760_v9  ;;  %682 = vmatpush3.bf16.msra.mxu1 %v785_v22  ;;  %v918_v47 = vrot.slane %v81_v45, %v89_v43  ;;  %v920_v48 = vrot.slane %v81_v45, %v85_v44 }
  0x2c   :  { %683 = vmatprep.subr.bf16.mxu1 %v786_v23 }
  0x2e   :  { %230 = vmatpush1.bf16.msra.mxu0 %v762_v10 }
  0x2f   :  { %231 = vmatprep.subr.bf16.mxu0 %v763_v11  ;;  %684 = vmatpush3.bf16.msra.mxu1 %v787_v25 }
  0x30   :  { %685 = vmatprep.subr.bf16.mxu1 %v788_v26 }
  0x32   :  { %232 = vmatpush1.bf16.msra.mxu0 %v765_v12 }
  0x33   :  { %233 = vmatprep.subr.bf16.mxu0 %v766_v13  ;;  %686 = vmatpush3.bf16.msra.mxu1 %v789_v27 }
  0x34   :  { %687 = vmatprep.subr.bf16.mxu1 %v790_v35 }
  0x36   :  { %234 = vmatpush1.bf16.msra.mxu0 %v768_v16 }
  0x37   :  { %235 = vmatprep.subr.bf16.mxu0 %v769_v20  ;;  %688 = vmatpush3.bf16.msra.mxu1 %v791_v36 }
  0x38   :  { %689 = vmatprep.subr.bf16.mxu1 %v792_v37 }
  0x3a   :  { %236 = vmatpush1.bf16.msra.mxu0 %v771_v21 }
  0x3b   :  { %690 = vmatpush3.bf16.msra.mxu1 %v793_v38 }
  0x3c   :  { %691 = vmatprep.subr.bf16.mxu1 %v794_v39 }
  0x3d   :  { %254 = vmatmul.mubr.bf16.vlgmr.msra.gmra.mxu0 %v772_v24 }
  0x3e   :  { %263 = vmatprep.mubr.bf16.mxu0 %v846_v0 }
  0x3f   :  { %692 = vmatpush3.bf16.msra.mxu1 %v795_v40 }
  0x45   :  { %264 = vmatmul.mubr.bf16.gmra.mxu0 %v773_v28 }
  0x46   :  { %273 = vmatprep.mubr.bf16.mxu0 %v846_v0 }
  0x4d   :  { %274 = vmatmul.mubr.bf16.gmra.mxu0 %v774_v29 }
  0x4e   :  { %283 = vmatprep.mubr.bf16.mxu0 %v846_v0 }
  0x55   :  { %284 = vmatmul.mubr.bf16.gmra.mxu0 %v775_v30 }
  0x56   :  { %293 = vmatprep.mubr.bf16.mxu0 %v846_v0 }
  0x5d   :  { %294 = vmatmul.mubr.bf16.gmra.mxu0 %v776_v31 }
  0x5e   :  { %303 = vmatprep.mubr.bf16.mxu0 %v846_v0 }
  0x65   :  { %304 = vmatmul.mubr.bf16.gmra.mxu0 %v777_v32 }
  0x66   :  { %313 = vmatprep.mubr.bf16.mxu0 %v846_v0 }
  0x6d   :  { %314 = vmatmul.mubr.bf16.gmra.mxu0 %v778_v33 }
  0x6e   :  { %323 = vmatprep.mubr.bf16.mxu0 %v846_v0 }
  0x75   :  { %324 = vmatmul.mubr.bf16.gmra.mxu0 %v779_v34 }
  0xfd   :  { %v255_v46 = vpop.f32.mrf.mxu0 }
  0xfe   :  { %v256_v53 = vadd.f32 %v255_v46, %v920_v48 }
  0xff   :  { %v257_v49 = vpop.f32.mrf.mxu0 }
 0x100   :  { %v258_v51 = vadd.f32 %v257_v49, %v918_v47  ;;  %v334_v60 = vmax.f32 %v256_v53, 0.0 }
 0x101   :  { %v259_v50 = vpop.f32.mrf.mxu0 }
 0x102   :  { %v260_v52 = vadd.f32 %v259_v50, %v920_v48  ;;  %v335_v58 = vmax.f32 %v258_v51, 0.0 }
 0x103   :  { %v261_v54 = vpop.f32.mrf.mxu0 }
 0x104   :  { %v262_v55 = vadd.f32 %v261_v54, %v918_v47  ;;  %v336_v56 = vmax.f32 %v260_v52, 0.0 }
 0x105   :  { %v265_v57 = vpop.f32.mrf.mxu0 }
 0x106   :  { %v337_v59 = vmax.f32 %v262_v55, 0.0  ;;  %v366_v63 = vpack.c.bf16 %v336_v56, %v334_v60  ;;  %v266_v3 = vadd.f32 %v265_v57, %v920_v48 }
 0x107   :  { %v267_v61 = vpop.f32.mrf.mxu0 }
 0x108   :  { %v367_v62 = vpack.c.bf16 %v337_v59, %v335_v58  ;;  %v268_v1 = vadd.f32 %v267_v61, %v918_v47  ;;  %v338_v10 = vmax.f32 %v266_v3, 0.0 }
 0x109   :  { %v269_v0 = vpop.f32.mrf.mxu0 }
 0x10a   :  { %v270_v2 = vadd.f32 %v269_v0, %v920_v48  ;;  %549 = vmatprep.mubr.bf16.mxu1 %v367_v62  ;;  %v339_v8 = vmax.f32 %v268_v1, 0.0 }
 0x10b   :  { %v271_v4 = vpop.f32.mrf.mxu0  ;;  %550 = vmatmul.mubr.bf16.vlgmr.msra.gmra.mxu1 %v366_v63 }
 0x10c   :  { %v272_v5 = vadd.f32 %v271_v4, %v918_v47  ;;  %v340_v6 = vmax.f32 %v270_v2, 0.0 }
 0x10d   :  { %v275_v7 = vpop.f32.mrf.mxu0 }
 0x10e   :  { %v341_v9 = vmax.f32 %v272_v5, 0.0  ;;  %v368_v13 = vpack.c.bf16 %v340_v6, %v338_v10  ;;  %v276_v17 = vadd.f32 %v275_v7, %v920_v48 }
 0x10f   :  { %v277_v11 = vpop.f32.mrf.mxu0 }
 0x110   :  { %v369_v12 = vpack.c.bf16 %v341_v9, %v339_v8  ;;  %v278_v15 = vadd.f32 %v277_v11, %v918_v47  ;;  %v342_v24 = vmax.f32 %v276_v17, 0.0 }
 0x111   :  { %v279_v14 = vpop.f32.mrf.mxu0 }
 0x112   :  { %v280_v16 = vadd.f32 %v279_v14, %v920_v48  ;;  %557 = vmatprep.mubr.bf16.mxu1 %v369_v12  ;;  %v343_v22 = vmax.f32 %v278_v15, 0.0 }
 0x113   :  { %v281_v18 = vpop.f32.mrf.mxu0  ;;  %558 = vmatmul.mubr.bf16.gmra.mxu1 %v368_v13 }
 0x114   :  { %v282_v19 = vadd.f32 %v281_v18, %v918_v47  ;;  %v344_v20 = vmax.f32 %v280_v16, 0.0 }
 0x115   :  { %v285_v21 = vpop.f32.mrf.mxu0 }
 0x116   :  { %v345_v23 = vmax.f32 %v282_v19, 0.0  ;;  %v370_v27 = vpack.c.bf16 %v344_v20, %v342_v24  ;;  %v286_v31 = vadd.f32 %v285_v21, %v920_v48 }
 0x117   :  { %v287_v25 = vpop.f32.mrf.mxu0 }
 0x118   :  { %v371_v26 = vpack.c.bf16 %v345_v23, %v343_v22  ;;  %v288_v29 = vadd.f32 %v287_v25, %v918_v47  ;;  %v346_v38 = vmax.f32 %v286_v31, 0.0 }
 0x119   :  { %v289_v28 = vpop.f32.mrf.mxu0 }
 0x11a   :  { %v290_v30 = vadd.f32 %v289_v28, %v920_v48  ;;  %565 = vmatprep.mubr.bf16.mxu1 %v371_v26  ;;  %v347_v36 = vmax.f32 %v288_v29, 0.0 }
 0x11b   :  { %v291_v32 = vpop.f32.mrf.mxu0  ;;  %566 = vmatmul.mubr.bf16.gmra.mxu1 %v370_v27 }
 0x11c   :  { %v292_v33 = vadd.f32 %v291_v32, %v918_v47  ;;  %v348_v34 = vmax.f32 %v290_v30, 0.0 }
 0x11d   :  { %v295_v35 = vpop.f32.mrf.mxu0 }
 0x11e   :  { %v349_v37 = vmax.f32 %v292_v33, 0.0  ;;  %v372_v41 = vpack.c.bf16 %v348_v34, %v346_v38  ;;  %v296_v45 = vadd.f32 %v295_v35, %v920_v48  ;;  %v957_v35 = vld [vmem:[%s1027_s4] ss:$0 sm:$0xff] }
 0x11f   :  { %v297_v39 = vpop.f32.mrf.mxu0 }
 0x120   :  { %v373_v40 = vpack.c.bf16 %v349_v37, %v347_v36  ;;  %v298_v43 = vadd.f32 %v297_v39, %v918_v47  ;;  %v350_v54 = vmax.f32 %v296_v45, 0.0 }
 0x121   :  { %v299_v42 = vpop.f32.mrf.mxu0 }
 0x122   :  { %v300_v44 = vadd.f32 %v299_v42, %v920_v48  ;;  %573 = vmatprep.mubr.bf16.mxu1 %v373_v40  ;;  %v351_v52 = vmax.f32 %v298_v43, 0.0 }
 0x123   :  { %v301_v46 = vpop.f32.mrf.mxu0  ;;  %574 = vmatmul.mubr.bf16.gmra.mxu1 %v372_v41 }
 0x124   :  { %v302_v49 = vadd.f32 %v301_v46, %v918_v47  ;;  %v352_v50 = vmax.f32 %v300_v44, 0.0 }
 0x125   :  { %v305_v51 = vpop.f32.mrf.mxu0 }
 0x126   :  { %v353_v53 = vmax.f32 %v302_v49, 0.0  ;;  %v374_v57 = vpack.c.bf16 %v352_v50, %v350_v54  ;;  %v306_v61 = vadd.f32 %v305_v51, %v920_v48 }
 0x127   :  { %v307_v55 = vpop.f32.mrf.mxu0 }
 0x128   :  { %v375_v56 = vpack.c.bf16 %v353_v53, %v351_v52  ;;  %v308_v59 = vadd.f32 %v307_v55, %v918_v47  ;;  %v354_v4 = vmax.f32 %v306_v61, 0.0 }
 0x129   :  { %v309_v58 = vpop.f32.mrf.mxu0 }
 0x12a   :  { %v310_v60 = vadd.f32 %v309_v58, %v920_v48  ;;  %581 = vmatprep.mubr.bf16.mxu1 %v375_v56  ;;  %v355_v2 = vmax.f32 %v308_v59, 0.0 }
 0x12b   :  { %v311_v62 = vpop.f32.mrf.mxu0  ;;  %582 = vmatmul.mubr.bf16.gmra.mxu1 %v374_v57 }
 0x12c   :  { %v312_v63 = vadd.f32 %v311_v62, %v918_v47  ;;  %v356_v0 = vmax.f32 %v310_v60, 0.0 }
 0x12d   :  { %v315_v1 = vpop.f32.mrf.mxu0 }
 0x12e   :  { %v357_v3 = vmax.f32 %v312_v63, 0.0  ;;  %v376_v7 = vpack.c.bf16 %v356_v0, %v354_v4  ;;  %v316_v11 = vadd.f32 %v315_v1, %v920_v48 }
 0x12f   :  { %v317_v5 = vpop.f32.mrf.mxu0 }
 0x130   :  { %v377_v6 = vpack.c.bf16 %v357_v3, %v355_v2  ;;  %v318_v9 = vadd.f32 %v317_v5, %v918_v47  ;;  %v358_v18 = vmax.f32 %v316_v11, 0.0 }
 0x131   :  { %v319_v8 = vpop.f32.mrf.mxu0 }
 0x132   :  { %v320_v10 = vadd.f32 %v319_v8, %v920_v48  ;;  %589 = vmatprep.mubr.bf16.mxu1 %v377_v6  ;;  %v359_v16 = vmax.f32 %v318_v9, 0.0 }
 0x133   :  { %v321_v12 = vpop.f32.mrf.mxu0  ;;  %590 = vmatmul.mubr.bf16.gmra.mxu1 %v376_v7 }
 0x134   :  { %v322_v13 = vadd.f32 %v321_v12, %v918_v47  ;;  %v360_v14 = vmax.f32 %v320_v10, 0.0 }
 0x135   :  { %v325_v15 = vpop.f32.mrf.mxu0 }
 0x136   :  { %v361_v17 = vmax.f32 %v322_v13, 0.0  ;;  %v378_v21 = vpack.c.bf16 %v360_v14, %v358_v18  ;;  %v326_v25 = vadd.f32 %v325_v15, %v920_v48 }
 0x137   :  { %v327_v19 = vpop.f32.mrf.mxu0 }
 0x138   :  { %v379_v20 = vpack.c.bf16 %v361_v17, %v359_v16  ;;  %v328_v23 = vadd.f32 %v327_v19, %v918_v47  ;;  %v362_v31 = vmax.f32 %v326_v25, 0.0 }
 0x139   :  { %v329_v22 = vpop.f32.mrf.mxu0 }
 0x13a   :  { %v330_v24 = vadd.f32 %v329_v22, %v920_v48  ;;  %597 = vmatprep.mubr.bf16.mxu1 %v379_v20  ;;  %v363_v29 = vmax.f32 %v328_v23, 0.0 }
 0x13b   :  { %v331_v26 = vpop.f32.mrf.mxu0  ;;  %598 = vmatmul.mubr.bf16.gmra.mxu1 %v378_v21 }
 0x13c   :  { %v332_v27 = vadd.f32 %v331_v26, %v918_v47  ;;  %v364_v28 = vmax.f32 %v330_v24, 0.0 }
 0x13e   :  { %v365_v30 = vmax.f32 %v332_v27, 0.0  ;;  %v380_v33 = vpack.c.bf16 %v364_v28, %v362_v31 }
 0x140   :  { %v381_v32 = vpack.c.bf16 %v365_v30, %v363_v29 }
 0x142   :  { %605 = vmatprep.mubr.bf16.mxu1 %v381_v32 }
 0x143   :  { %606 = vmatmul.mubr.bf16.gmra.mxu1 %v380_v33 }
 0x1cb   :  { %v693_v34 = vpop.f32.mrf.mxu1 }
 0x1cd   :  { %v694_v36 = vpop.f32.mrf.mxu1 }
 0x1ce   :  { %v695_v48 = vadd.f32 %v694_v36, %v693_v34 }
 0x1cf   :  { %v696_v37 = vpop.f32.mrf.mxu1 }
 0x1d0   :  { %v552_v38 = vadd.f32 %v695_v48, %v957_v35 }
 0x1d1   :  { %v697_v47 = vpop.f32.mrf.mxu1 }
 0x1d2   :  { %614 = vst [vmem:[%s1028_s5] sm:$0xff] %v552_v38  ;;  %v698_v39 = vadd.f32 %v697_v47, %v696_v37 }
 0x1d3   :  { %v699_v40 = vpop.f32.mrf.mxu1 }
 0x1d4   :  { %v555_v41 = vadd.f32 %v698_v39, %v957_v35 }
 0x1d5   :  { %v700_v42 = vpop.f32.mrf.mxu1 }
 0x1d6   :  { %615 = vst [vmem:[%s1028_s5 + $0x8] sm:$0xff] %v555_v41  ;;  %v701_v43 = vadd.f32 %v700_v42, %v699_v40 }
 0x1d7   :  { %v702_v44 = vpop.f32.mrf.mxu1 }
 0x1d8   :  { %v560_v45 = vadd.f32 %v701_v43, %v957_v35 }
 0x1d9   :  { %v703_v46 = vpop.f32.mrf.mxu1 }
 0x1da   :  { %616 = vst [vmem:[%s1028_s5 + $0x10] sm:$0xff] %v560_v45  ;;  %v704_v49 = vadd.f32 %v703_v46, %v702_v44 }
 0x1db   :  { %v705_v50 = vpop.f32.mrf.mxu1 }
 0x1dc   :  { %v563_v51 = vadd.f32 %v704_v49, %v957_v35 }
 0x1dd   :  { %v706_v52 = vpop.f32.mrf.mxu1 }
 0x1de   :  { %617 = vst [vmem:[%s1028_s5 + $0x18] sm:$0xff] %v563_v51  ;;  %v707_v53 = vadd.f32 %v706_v52, %v705_v50 }
 0x1df   :  { %v708_v54 = vpop.f32.mrf.mxu1 }
 0x1e0   :  { %v568_v55 = vadd.f32 %v707_v53, %v957_v35 }
 0x1e1   :  { %v709_v56 = vpop.f32.mrf.mxu1 }
 0x1e2   :  { %618 = vst [vmem:[%s1028_s5 + $0x20] sm:$0xff] %v568_v55  ;;  %v710_v57 = vadd.f32 %v709_v56, %v708_v54 }
 0x1e3   :  { %v711_v58 = vpop.f32.mrf.mxu1 }
 0x1e4   :  { %v571_v59 = vadd.f32 %v710_v57, %v957_v35 }
 0x1e5   :  { %v712_v60 = vpop.f32.mrf.mxu1 }
 0x1e6   :  { %619 = vst [vmem:[%s1028_s5 + $0x28] sm:$0xff] %v571_v59  ;;  %v713_v61 = vadd.f32 %v712_v60, %v711_v58 }
 0x1e7   :  { %v714_v62 = vpop.f32.mrf.mxu1 }
 0x1e8   :  { %v576_v63 = vadd.f32 %v713_v61, %v957_v35 }
 0x1e9   :  { %v715_v0 = vpop.f32.mrf.mxu1 }
 0x1ea   :  { %620 = vst [vmem:[%s1028_s5 + $0x30] sm:$0xff] %v576_v63  ;;  %v716_v1 = vadd.f32 %v715_v0, %v714_v62 }
 0x1eb   :  { %v717_v2 = vpop.f32.mrf.mxu1 }
 0x1ec   :  { %v579_v3 = vadd.f32 %v716_v1, %v957_v35 }
 0x1ed   :  { %v718_v4 = vpop.f32.mrf.mxu1 }
 0x1ee   :  { %621 = vst [vmem:[%s1028_s5 + $0x38] sm:$0xff] %v579_v3  ;;  %v719_v5 = vadd.f32 %v718_v4, %v717_v2 }
 0x1ef   :  { %v720_v6 = vpop.f32.mrf.mxu1 }
 0x1f0   :  { %v584_v7 = vadd.f32 %v719_v5, %v957_v35 }
 0x1f1   :  { %v721_v8 = vpop.f32.mrf.mxu1 }
 0x1f2   :  { %622 = vst [vmem:[%s1028_s5 + $0x40] sm:$0xff] %v584_v7  ;;  %v722_v9 = vadd.f32 %v721_v8, %v720_v6 }
 0x1f3   :  { %v723_v10 = vpop.f32.mrf.mxu1 }
 0x1f4   :  { %v587_v11 = vadd.f32 %v722_v9, %v957_v35 }
 0x1f5   :  { %v724_v12 = vpop.f32.mrf.mxu1 }
 0x1f6   :  { %623 = vst [vmem:[%s1028_s5 + $0x48] sm:$0xff] %v587_v11  ;;  %v725_v13 = vadd.f32 %v724_v12, %v723_v10 }
 0x1f7   :  { %v726_v14 = vpop.f32.mrf.mxu1 }
 0x1f8   :  { %v592_v15 = vadd.f32 %v725_v13, %v957_v35 }
 0x1f9   :  { %v727_v16 = vpop.f32.mrf.mxu1 }
 0x1fa   :  { %624 = vst [vmem:[%s1028_s5 + $0x50] sm:$0xff] %v592_v15  ;;  %v728_v17 = vadd.f32 %v727_v16, %v726_v14 }
 0x1fb   :  { %v729_v18 = vpop.f32.mrf.mxu1 }
 0x1fc   :  { %v595_v19 = vadd.f32 %v728_v17, %v957_v35 }
 0x1fd   :  { %v730_v20 = vpop.f32.mrf.mxu1 }
 0x1fe   :  { %625 = vst [vmem:[%s1028_s5 + $0x58] sm:$0xff] %v595_v19  ;;  %v731_v21 = vadd.f32 %v730_v20, %v729_v18 }
 0x1ff   :  { %v732_v22 = vpop.f32.mrf.mxu1 }
 0x200   :  { %v600_v23 = vadd.f32 %v731_v21, %v957_v35 }
 0x201   :  { %v733_v24 = vpop.f32.mrf.mxu1 }
 0x202   :  { %626 = vst [vmem:[%s1028_s5 + $0x60] sm:$0xff] %v600_v23  ;;  %v734_v25 = vadd.f32 %v733_v24, %v732_v22 }
 0x203   :  { %v735_v26 = vpop.f32.mrf.mxu1 }
 0x204   :  { %v603_v27 = vadd.f32 %v734_v25, %v957_v35 }
 0x205   :  { %v736_v28 = vpop.f32.mrf.mxu1 }
 0x206   :  { %627 = vst [vmem:[%s1028_s5 + $0x68] sm:$0xff] %v603_v27  ;;  %v737_v29 = vadd.f32 %v736_v28, %v735_v26 }
 0x207   :  { %v738_v30 = vpop.f32.mrf.mxu1 }
 0x208   :  { %v608_v31 = vadd.f32 %v737_v29, %v957_v35 }
 0x209   :  { %v739_v32 = vpop.f32.mrf.mxu1 }
 0x20a   :  { %628 = vst [vmem:[%s1028_s5 + $0x70] sm:$0xff] %v608_v31  ;;  %v740_v33 = vadd.f32 %v739_v32, %v738_v30 }
 0x20c   :  { %v611_v34 = vadd.f32 %v740_v33, %v957_v35 }
 0x20e   :  { %629 = vst [vmem:[%s1028_s5 + $0x78] sm:$0xff] %v611_v34 }
 0x20f   :  { %634 = vsyncpa [#allocation3], 1 }
 0x210   :  { %635 = vsyncpa [#allocation5], 1 }

</bundles_post_ra>
